<compile_context>
chip_gen: v6e
topology: v6e:2x2x1
jax: 0.10.0
libtpu: 0.0.40
codegen_flags: <defaults>
</compile_context>

<pallas_src>
import functools

import numpy as np
import jax
import jax.numpy as jnp
from jax.experimental import pallas as pl
from jax.experimental.pallas import tpu as pltpu


# ---------------------------------------------------------------------------
# Static PixelCNN masks (mask_center=False, the module default).
# ---------------------------------------------------------------------------
def _vertical_mask(k):
    m = np.ones((k, k), dtype=np.float32)
    m[k // 2 + 1:, :] = 0.0
    return m


def _horizontal_mask(k):
    m = np.ones((1, k), dtype=np.float32)
    m[0, k // 2 + 1:] = 0.0
    return m


# ---------------------------------------------------------------------------
# Kernel: `block_batch` images per grid step, fully fused, lane-dense.
# ---------------------------------------------------------------------------
def _gated_conv_kernel(lhs_ref, rT_ref, wh1_ref, bh1_ref, vout_ref, hout_ref,
                       *, C, xh_row0):
    """Refs per grid step:
      lhs_ref : [1, Kp, B*HW]  dense im2col (tap rows + s rows + ones row),
                               spatial (lane) axis last.
      rT_ref  : [4C, Kp]       fused weights; rows = [h_tan|h_sig|v_tan|v_sig],
                               last column holds the pre-summed biases.
      wh1_ref : [C, C]  (SMEM) h_conv_1x1 weight;  bh1_ref : [C] (SMEM) bias.
      vout_ref/hout_ref : [1, C, B*HW]  lane-dense outputs.
    """
    lhs = lhs_ref[0]                                          # [Kp, B*HW]

    # Single fused MXU matmul: both streams' pre-activations, biases included.
    pre = jnp.dot(rT_ref[...], lhs, preferred_element_type=jnp.float32)

    h_tan = pre[0 * C:1 * C]
    h_sig = pre[1 * C:2 * C]
    v_tan = pre[2 * C:3 * C]
    v_sig = pre[3 * C:4 * C]

    # sigmoid(x) == 0.5*tanh(0.5*x) + 0.5  (EUP tanh; no divide, no overflow).
    v_out = jnp.tanh(v_tan) * (0.5 * jnp.tanh(0.5 * v_sig) + 0.5)
    h_gated = jnp.tanh(h_tan) * (0.5 * jnp.tanh(0.5 * h_sig) + 0.5)

    # Residual x_h is exactly the center horizontal-tap rows of the im2col.
    x_h_res = lhs[xh_row0:xh_row0 + C]                        # [C, B*HW]

    # h_conv_1x1 (C x C, C=4): C*C scalar-broadcast FMAs on the VPU instead of
    # a second MXU dot; scalars come from SMEM.
    h_rows = []
    for co in range(C):
        acc = x_h_res[co:co + 1, :] + bh1_ref[co]
        for ci in range(C):
            acc = acc + wh1_ref[co, ci] * h_gated[ci:ci + 1, :]
        h_rows.append(acc)
    h_out = jnp.concatenate(h_rows, axis=0)                   # [C, B*HW]

    vout_ref[0] = v_out.astype(vout_ref.dtype)
    hout_ref[0] = h_out.astype(hout_ref.dtype)


# ---------------------------------------------------------------------------
# Wrapper: static tap selection, weight/bias folding, dense im2col, layout.
# ---------------------------------------------------------------------------
def _pick_block_batch(n):
    """Largest divisor of n that is <= 8 while keeping >= 2 grid steps
    (so both v7x TensorCores get work); otherwise largest divisor <= 8."""
    best_two_steps, best_any = None, 1
    for b in range(1, min(n, 8) + 1):
        if n % b == 0:
            best_any = b
            if n // b >= 2:
                best_two_steps = b
    return best_two_steps if best_two_steps is not None else best_any


def gated_conv(x_v, x_h, s, params, *, kernel_size=3, block_batch=None):
    """Fused GatedConv forward. Inputs/outputs are NCHW like PyTorch.

    x_v, x_h, s : [N, C, H, W] float32
    params      : dict of PyTorch-shaped Conv2d weights/biases (see __main__).
    returns (v_stack_out, h_stack_out), each [N, C, H, W].
    """
    N, C, H, W = x_v.shape
    k = kernel_size
    assert k % 2 == 1, "only odd kernel sizes give the module's 'same' padding"
    p = (k - 1) // 2
    C2 = 2 * C
    HW = H * W
    dtype = x_v.dtype

    # Static masks -> zero taps elided at trace time.
    mask_v = _vertical_mask(k)
    mask_h = _horizontal_mask(k)
    v_taps = tuple((kh, kw) for kh in range(k) for kw in range(k)
                   if mask_v[kh, kw] != 0.0)
    h_taps = tuple(kw for kw in range(k) if mask_h[0, kw] != 0.0)
    Th, Tv = len(h_taps), len(v_taps)
    # mask_center=False keeps the center horizontal tap -> residual x_h is
    # already a row-block of the im2col operand.
    assert p in h_taps, "residual path expects the unmasked center h-tap"
    xh_row0 = h_taps.index(p) * C
    Kp = (Th + Tv + 1) * C + 1          # tap rows + s rows + constant-1 row

    B = block_batch if block_batch is not None else _pick_block_batch(N)
    assert N % B == 0, "block_batch must divide N"
    G = N // B
    BHW = B * HW

    # ---- wrapper-side weight algebra (tiny matrices, once per call) --------
    w_v = params["w_v"]                              # [2C, C, k, k]
    w_h = params["w_h"]                              # [2C, C, 1, k]
    w_v1 = params["w_v1"][:, :, 0, 0].T              # [2C_in, 2C_out]
    w_h1 = params["w_h1"][:, :, 0, 0]                # [C_out, C_in]
    w_sv = params["w_sv"][:, :, 0, 0].T              # [C, 2C]
    w_sh = params["w_sh"][:, :, 0, 0].T              # [C, 2C]
    b_v, b_h = params["b_v"], params["b_h"]
    b_v1, b_h1 = params["b_v1"], params["b_h1"]
    b_sv, b_sh = params["b_sv"], params["b_sh"]

    # Tap-major masked-conv weights (nonzero taps only).
    wh_taps = jnp.concatenate(
        [(w_h[:, :, 0, kw] * mask_h[0, kw]).T for kw in h_taps], axis=0)
    wv_taps = jnp.concatenate(
        [(w_v[:, :, kh, kw] * mask_v[kh, kw]).T for (kh, kw) in v_taps], axis=0)

    # Fold v_conv_1x1(v_conv(x)) , the s projections AND the biases into one
    # RHS (biases ride on the constant-1 im2col row):
    #   h_pre = Wh*xh + (Wv@Wv1)*xv + Wsh*s + (b_h + b_v@Wv1 + b_v1 + b_sh)
    #   v_pre = Wv*xv + Wsv*s + (b_v + b_sv)
    bias_h = (b_h + b_v @ w_v1 + b_v1 + b_sh)[None, :]
    bias_v = (b_v + b_sv)[None, :]
    r_h = jnp.concatenate([wh_taps, wv_taps @ w_v1, w_sh, bias_h], axis=0)
    r_v = jnp.concatenate([jnp.zeros((Th * C, C2), dtype), wv_taps, w_sv,
                           bias_v], axis=0)
    r_T = jnp.concatenate([r_h, r_v], axis=1).T.astype(dtype)   # [4C, Kp]

    # ---- dense, spatial-minor im2col built in the wrapper -------------------
    xv_pad = jnp.pad(x_v, ((0, 0), (0, 0), (p, p), (p, p)))  # [N,C,H+2p,W+2p]
    xh_pad = jnp.pad(x_h, ((0, 0), (0, 0), (0, 0), (p, p)))  # [N,C,H,  W+2p]

    rows = [xh_pad[:, :, :, kw:kw + W].reshape(N, C, HW) for kw in h_taps]
    rows += [xv_pad[:, :, kh:kh + H, kw:kw + W].reshape(N, C, HW)
             for (kh, kw) in v_taps]
    rows.append(s.reshape(N, C, HW))
    rows.append(jnp.ones((N, 1, HW), dtype))                 # bias row
    lhs = jnp.concatenate(rows, axis=1)                      # [N, Kp, HW]
    # Batch-block: fold B images into the lane axis of one grid step.
    lhs = lhs.reshape(G, B, Kp, HW).transpose(0, 2, 1, 3).reshape(G, Kp, BHW)

    kernel = functools.partial(_gated_conv_kernel, C=C, xh_row0=xh_row0)

    v_out, h_out = pl.pallas_call(
        kernel,
        out_shape=(jax.ShapeDtypeStruct((G, C, BHW), dtype),
                   jax.ShapeDtypeStruct((G, C, BHW), dtype)),
        grid_spec=pltpu.PrefetchScalarGridSpec(
            num_scalar_prefetch=0,
            grid=(G,),
            in_specs=[
                pl.BlockSpec((1, Kp, BHW), lambda g: (g, 0, 0)),
                pl.BlockSpec((4 * C, Kp), lambda g: (0, 0)),
                pl.BlockSpec(memory_space=pltpu.MemorySpace.SMEM),  # w_h1
                pl.BlockSpec(memory_space=pltpu.MemorySpace.SMEM),  # b_h1
            ],
            out_specs=(
                pl.BlockSpec((1, C, BHW), lambda g: (g, 0, 0)),
                pl.BlockSpec((1, C, BHW), lambda g: (g, 0, 0)),
            ),
        ),
        compiler_params=pltpu.CompilerParams(
            dimension_semantics=("parallel",)),
    )(lhs, r_T, w_h1, b_h1)

    def unblock(y):
        return (y.reshape(G, C, B, H, W)
                 .transpose(0, 2, 1, 3, 4)
                 .reshape(N, C, H, W))

    return unblock(v_out), unblock(h_out)


# ---------------------------------------------------------------------------
# Pure-JAX reference (mirrors the PyTorch forward op-for-op).
# ---------------------------------------------------------------------------
def _ref_gated_conv(x_v, x_h, s, params, *, kernel_size=3):
    k = kernel_size
    p = (k - 1) // 2
    C = x_v.shape[1]
    mask_v = jnp.asarray(_vertical_mask(k))
    mask_h = jnp.asarray(_horizontal_mask(k))

    def conv(x, w, b, pad):
        y = jax.lax.conv_general_dilated(
            x, w, window_strides=(1, 1), padding=pad,
            dimension_numbers=("NCHW", "OIHW", "NCHW"))
        return y + b[None, :, None, None]

    s_v = conv(s, params["w_sv"], params["b_sv"], ((0, 0), (0, 0)))
    s_h = conv(s, params["w_sh"], params["b_sh"], ((0, 0), (0, 0)))

    v_feat = conv(x_v, params["w_v"] * mask_v[None, None], params["b_v"],
                  ((p, p), (p, p)))
    v_tan = v_feat[:, :C] + s_v[:, :C]
    v_sig = v_feat[:, C:] + s_v[:, C:]
    v_out = jnp.tanh(v_tan) * jax.nn.sigmoid(v_sig)

    h_feat = conv(x_h, params["w_h"] * mask_h[None, None], params["b_h"],
                  ((0, 0), (p, p)))
    h_feat = h_feat + conv(v_feat, params["w_v1"], params["b_v1"], ((0, 0), (0, 0)))
    h_tan = h_feat[:, :C] + s_h[:, :C]
    h_sig = h_feat[:, C:] + s_h[:, C:]
    h_gated = jnp.tanh(h_tan) * jax.nn.sigmoid(h_sig)
    h_out = conv(h_gated, params["w_h1"], params["b_h1"], ((0, 0), (0, 0))) + x_h
    return v_out, h_out


if __name__ == "__main__":
    N, C, H, W, k = 2, 4, 16, 16, 3

    key = jax.random.PRNGKey(0)
    keys = jax.random.split(key, 15)

    def nrm(kk, shape, scale):
        return jax.random.normal(kk, shape, dtype=jnp.float32) * scale

    x_v = nrm(keys[0], (N, C, H, W), 1.0)
    x_h = nrm(keys[1], (N, C, H, W), 1.0)
    s = nrm(keys[2], (N, C, H, W), 1.0)

    params = {
        "w_v": nrm(keys[3], (2 * C, C, k, k), 0.1), "b_v": nrm(keys[4], (2 * C,), 0.1),
        "w_h": nrm(keys[5], (2 * C, C, 1, k), 0.1), "b_h": nrm(keys[6], (2 * C,), 0.1),
        "w_v1": nrm(keys[7], (2 * C, 2 * C, 1, 1), 0.1), "b_v1": nrm(keys[8], (2 * C,), 0.1),
        "w_h1": nrm(keys[9], (C, C, 1, 1), 0.1), "b_h1": nrm(keys[10], (C,), 0.1),
        "w_sv": nrm(keys[11], (2 * C, C, 1, 1), 0.1), "b_sv": nrm(keys[12], (2 * C,), 0.1),
        "w_sh": nrm(keys[13], (2 * C, C, 1, 1), 0.1), "b_sh": nrm(keys[14], (2 * C,), 0.1),
    }

    run = jax.jit(functools.partial(gated_conv, kernel_size=k))
    v_out, h_out = run(x_v, x_h, s, params)
    v_out, h_out = jax.block_until_ready((v_out, h_out))

    v_ref, h_ref = _ref_gated_conv(x_v, x_h, s, params, kernel_size=k)
    assert v_out.shape == (N, C, H, W) and h_out.shape == (N, C, H, W)
    assert jnp.allclose(v_out, v_ref, atol=1e-3, rtol=1e-3), "v_stack_out mismatch"
    assert jnp.allclose(h_out, h_ref, atol=1e-3, rtol=1e-3), "h_stack_out mismatch"

    print("KERNEL_OK")
</pallas_src>

<mosaic_0001>
module attributes {stable_mosaic.version = 11 : i64} {
  func.func @_gated_conv_kernel(%arg0: i32, %arg1: memref<1x37x256xf32, #tpu.memory_space<vmem>>, %arg2: memref<16x37xf32, #tpu.memory_space<vmem>>, %arg3: memref<4x4xf32, #tpu.memory_space<smem>>, %arg4: memref<4xf32, #tpu.memory_space<smem>>, %arg5: memref<1x4x256xf32, #tpu.memory_space<vmem>>, %arg6: memref<1x4x256xf32, #tpu.memory_space<vmem>>) attributes {dimension_semantics = [#tpu.dimension_semantics<parallel>], iteration_bounds = array<i64: 2>, scalar_prefetch = 0 : i64, scratch_operands = 0 : i64, tpu.core_type = #tpu.core_type<tc>, window_params = [{transform_indices = @transform_0, window_bounds = array<i64: 1, 37, 256>}, {pipeline_mode = #tpu.pipeline_mode<synchronous>, transform_indices = @transform_1, window_bounds = array<i64: 16, 37>}, {transform_indices = @transform_2, window_bounds = array<i64: 4, 4>}, {transform_indices = @transform_3, window_bounds = array<i64: 4>}, {transform_indices = @transform_4, window_bounds = array<i64: 1, 4, 256>}, {transform_indices = @transform_5, window_bounds = array<i64: 1, 4, 256>}]} {
    %c0 = arith.constant 0 : index
    %c0_0 = arith.constant 0 : index
    %c0_1 = arith.constant 0 : index
    %0 = vector.load %arg1[%c0, %c0_0, %c0_1] : memref<1x37x256xf32, #tpu.memory_space<vmem>>, vector<1x37x256xf32>
    %1 = vector.shape_cast %0 : vector<1x37x256xf32> to vector<37x256xf32>
    %c0_2 = arith.constant 0 : index
    %c0_3 = arith.constant 0 : index
    %2 = vector.load %arg2[%c0_2, %c0_3] : memref<16x37xf32, #tpu.memory_space<vmem>>, vector<16x37xf32>
    %cst = arith.constant dense<0.000000e+00> : vector<16x256xf32>
    %3 = tpu.matmul %2, %1, %cst {dimension_numbers = #tpu.dot_dimension_numbers<[1], [0], [0], [1], [0, 0, 1, 1], [], []>} : vector<16x37xf32>, vector<37x256xf32>, vector<16x256xf32> -> vector<16x256xf32>
    %4 = vector.extract_strided_slice %3 {offsets = [0, 0], sizes = [4, 256], strides = [1, 1]} : vector<16x256xf32> to vector<4x256xf32>
    %5 = vector.extract_strided_slice %3 {offsets = [4, 0], sizes = [4, 256], strides = [1, 1]} : vector<16x256xf32> to vector<4x256xf32>
    %6 = vector.extract_strided_slice %3 {offsets = [8, 0], sizes = [4, 256], strides = [1, 1]} : vector<16x256xf32> to vector<4x256xf32>
    %7 = vector.extract_strided_slice %3 {offsets = [12, 0], sizes = [4, 256], strides = [1, 1]} : vector<16x256xf32> to vector<4x256xf32>
    %8 = math.tanh %6 : vector<4x256xf32>
    %cst_4 = arith.constant 5.000000e-01 : f32
    %9 = vector.broadcast %cst_4 : f32 to vector<4x256xf32>
    %10 = arith.mulf %9, %7 : vector<4x256xf32>
    %11 = math.tanh %10 : vector<4x256xf32>
    %cst_5 = arith.constant 5.000000e-01 : f32
    %12 = vector.broadcast %cst_5 : f32 to vector<4x256xf32>
    %13 = arith.mulf %12, %11 : vector<4x256xf32>
    %cst_6 = arith.constant 5.000000e-01 : f32
    %14 = vector.broadcast %cst_6 : f32 to vector<4x256xf32>
    %15 = arith.addf %13, %14 : vector<4x256xf32>
    %16 = arith.mulf %8, %15 : vector<4x256xf32>
    %17 = math.tanh %4 : vector<4x256xf32>
    %cst_7 = arith.constant 5.000000e-01 : f32
    %18 = vector.broadcast %cst_7 : f32 to vector<4x256xf32>
    %19 = arith.mulf %18, %5 : vector<4x256xf32>
    %20 = math.tanh %19 : vector<4x256xf32>
    %cst_8 = arith.constant 5.000000e-01 : f32
    %21 = vector.broadcast %cst_8 : f32 to vector<4x256xf32>
    %22 = arith.mulf %21, %20 : vector<4x256xf32>
    %cst_9 = arith.constant 5.000000e-01 : f32
    %23 = vector.broadcast %cst_9 : f32 to vector<4x256xf32>
    %24 = arith.addf %22, %23 : vector<4x256xf32>
    %25 = arith.mulf %17, %24 : vector<4x256xf32>
    %26 = vector.extract_strided_slice %1 {offsets = [4, 0], sizes = [4, 256], strides = [1, 1]} : vector<37x256xf32> to vector<4x256xf32>
    %27 = vector.extract_strided_slice %26 {offsets = [0, 0], sizes = [1, 256], strides = [1, 1]} : vector<4x256xf32> to vector<1x256xf32>
    %c0_10 = arith.constant 0 : index
    %28 = memref.load %arg4[%c0_10] : memref<4xf32, #tpu.memory_space<smem>>
    %29 = vector.broadcast %28 : f32 to vector<1x256xf32>
    %30 = arith.addf %27, %29 : vector<1x256xf32>
    %c0_11 = arith.constant 0 : index
    %c0_12 = arith.constant 0 : index
    %31 = memref.load %arg3[%c0_11, %c0_12] : memref<4x4xf32, #tpu.memory_space<smem>>
    %32 = vector.extract_strided_slice %25 {offsets = [0, 0], sizes = [1, 256], strides = [1, 1]} : vector<4x256xf32> to vector<1x256xf32>
    %33 = vector.broadcast %31 : f32 to vector<1x256xf32>
    %34 = arith.mulf %33, %32 : vector<1x256xf32>
    %35 = arith.addf %30, %34 : vector<1x256xf32>
    %c0_13 = arith.constant 0 : index
    %c1 = arith.constant 1 : index
    %36 = memref.load %arg3[%c0_13, %c1] : memref<4x4xf32, #tpu.memory_space<smem>>
    %37 = vector.extract_strided_slice %25 {offsets = [1, 0], sizes = [1, 256], strides = [1, 1]} : vector<4x256xf32> to vector<1x256xf32>
    %38 = vector.broadcast %36 : f32 to vector<1x256xf32>
    %39 = arith.mulf %38, %37 : vector<1x256xf32>
    %40 = arith.addf %35, %39 : vector<1x256xf32>
    %c0_14 = arith.constant 0 : index
    %c2 = arith.constant 2 : index
    %41 = memref.load %arg3[%c0_14, %c2] : memref<4x4xf32, #tpu.memory_space<smem>>
    %42 = vector.extract_strided_slice %25 {offsets = [2, 0], sizes = [1, 256], strides = [1, 1]} : vector<4x256xf32> to vector<1x256xf32>
    %43 = vector.broadcast %41 : f32 to vector<1x256xf32>
    %44 = arith.mulf %43, %42 : vector<1x256xf32>
    %45 = arith.addf %40, %44 : vector<1x256xf32>
    %c0_15 = arith.constant 0 : index
    %c3 = arith.constant 3 : index
    %46 = memref.load %arg3[%c0_15, %c3] : memref<4x4xf32, #tpu.memory_space<smem>>
    %47 = vector.extract_strided_slice %25 {offsets = [3, 0], sizes = [1, 256], strides = [1, 1]} : vector<4x256xf32> to vector<1x256xf32>
    %48 = vector.broadcast %46 : f32 to vector<1x256xf32>
    %49 = arith.mulf %48, %47 : vector<1x256xf32>
    %50 = arith.addf %45, %49 : vector<1x256xf32>
    %51 = vector.extract_strided_slice %26 {offsets = [1, 0], sizes = [1, 256], strides = [1, 1]} : vector<4x256xf32> to vector<1x256xf32>
    %c1_16 = arith.constant 1 : index
    %52 = memref.load %arg4[%c1_16] : memref<4xf32, #tpu.memory_space<smem>>
    %53 = vector.broadcast %52 : f32 to vector<1x256xf32>
    %54 = arith.addf %51, %53 : vector<1x256xf32>
    %c1_17 = arith.constant 1 : index
    %c0_18 = arith.constant 0 : index
    %55 = memref.load %arg3[%c1_17, %c0_18] : memref<4x4xf32, #tpu.memory_space<smem>>
    %56 = vector.extract_strided_slice %25 {offsets = [0, 0], sizes = [1, 256], strides = [1, 1]} : vector<4x256xf32> to vector<1x256xf32>
    %57 = vector.broadcast %55 : f32 to vector<1x256xf32>
    %58 = arith.mulf %57, %56 : vector<1x256xf32>
    %59 = arith.addf %54, %58 : vector<1x256xf32>
    %c1_19 = arith.constant 1 : index
    %c1_20 = arith.constant 1 : index
    %60 = memref.load %arg3[%c1_19, %c1_20] : memref<4x4xf32, #tpu.memory_space<smem>>
    %61 = vector.extract_strided_slice %25 {offsets = [1, 0], sizes = [1, 256], strides = [1, 1]} : vector<4x256xf32> to vector<1x256xf32>
    %62 = vector.broadcast %60 : f32 to vector<1x256xf32>
    %63 = arith.mulf %62, %61 : vector<1x256xf32>
    %64 = arith.addf %59, %63 : vector<1x256xf32>
    %c1_21 = arith.constant 1 : index
    %c2_22 = arith.constant 2 : index
    %65 = memref.load %arg3[%c1_21, %c2_22] : memref<4x4xf32, #tpu.memory_space<smem>>
    %66 = vector.extract_strided_slice %25 {offsets = [2, 0], sizes = [1, 256], strides = [1, 1]} : vector<4x256xf32> to vector<1x256xf32>
    %67 = vector.broadcast %65 : f32 to vector<1x256xf32>
    %68 = arith.mulf %67, %66 : vector<1x256xf32>
    %69 = arith.addf %64, %68 : vector<1x256xf32>
    %c1_23 = arith.constant 1 : index
    %c3_24 = arith.constant 3 : index
    %70 = memref.load %arg3[%c1_23, %c3_24] : memref<4x4xf32, #tpu.memory_space<smem>>
    %71 = vector.extract_strided_slice %25 {offsets = [3, 0], sizes = [1, 256], strides = [1, 1]} : vector<4x256xf32> to vector<1x256xf32>
    %72 = vector.broadcast %70 : f32 to vector<1x256xf32>
    %73 = arith.mulf %72, %71 : vector<1x256xf32>
    %74 = arith.addf %69, %73 : vector<1x256xf32>
    %75 = vector.extract_strided_slice %26 {offsets = [2, 0], sizes = [1, 256], strides = [1, 1]} : vector<4x256xf32> to vector<1x256xf32>
    %c2_25 = arith.constant 2 : index
    %76 = memref.load %arg4[%c2_25] : memref<4xf32, #tpu.memory_space<smem>>
    %77 = vector.broadcast %76 : f32 to vector<1x256xf32>
    %78 = arith.addf %75, %77 : vector<1x256xf32>
    %c2_26 = arith.constant 2 : index
    %c0_27 = arith.constant 0 : index
    %79 = memref.load %arg3[%c2_26, %c0_27] : memref<4x4xf32, #tpu.memory_space<smem>>
    %80 = vector.extract_strided_slice %25 {offsets = [0, 0], sizes = [1, 256], strides = [1, 1]} : vector<4x256xf32> to vector<1x256xf32>
    %81 = vector.broadcast %79 : f32 to vector<1x256xf32>
    %82 = arith.mulf %81, %80 : vector<1x256xf32>
    %83 = arith.addf %78, %82 : vector<1x256xf32>
    %c2_28 = arith.constant 2 : index
    %c1_29 = arith.constant 1 : index
    %84 = memref.load %arg3[%c2_28, %c1_29] : memref<4x4xf32, #tpu.memory_space<smem>>
    %85 = vector.extract_strided_slice %25 {offsets = [1, 0], sizes = [1, 256], strides = [1, 1]} : vector<4x256xf32> to vector<1x256xf32>
    %86 = vector.broadcast %84 : f32 to vector<1x256xf32>
    %87 = arith.mulf %86, %85 : vector<1x256xf32>
    %88 = arith.addf %83, %87 : vector<1x256xf32>
    %c2_30 = arith.constant 2 : index
    %c2_31 = arith.constant 2 : index
    %89 = memref.load %arg3[%c2_30, %c2_31] : memref<4x4xf32, #tpu.memory_space<smem>>
    %90 = vector.extract_strided_slice %25 {offsets = [2, 0], sizes = [1, 256], strides = [1, 1]} : vector<4x256xf32> to vector<1x256xf32>
    %91 = vector.broadcast %89 : f32 to vector<1x256xf32>
    %92 = arith.mulf %91, %90 : vector<1x256xf32>
    %93 = arith.addf %88, %92 : vector<1x256xf32>
    %c2_32 = arith.constant 2 : index
    %c3_33 = arith.constant 3 : index
    %94 = memref.load %arg3[%c2_32, %c3_33] : memref<4x4xf32, #tpu.memory_space<smem>>
    %95 = vector.extract_strided_slice %25 {offsets = [3, 0], sizes = [1, 256], strides = [1, 1]} : vector<4x256xf32> to vector<1x256xf32>
    %96 = vector.broadcast %94 : f32 to vector<1x256xf32>
    %97 = arith.mulf %96, %95 : vector<1x256xf32>
    %98 = arith.addf %93, %97 : vector<1x256xf32>
    %99 = vector.extract_strided_slice %26 {offsets = [3, 0], sizes = [1, 256], strides = [1, 1]} : vector<4x256xf32> to vector<1x256xf32>
    %c3_34 = arith.constant 3 : index
    %100 = memref.load %arg4[%c3_34] : memref<4xf32, #tpu.memory_space<smem>>
    %101 = vector.broadcast %100 : f32 to vector<1x256xf32>
    %102 = arith.addf %99, %101 : vector<1x256xf32>
    %c3_35 = arith.constant 3 : index
    %c0_36 = arith.constant 0 : index
    %103 = memref.load %arg3[%c3_35, %c0_36] : memref<4x4xf32, #tpu.memory_space<smem>>
    %104 = vector.extract_strided_slice %25 {offsets = [0, 0], sizes = [1, 256], strides = [1, 1]} : vector<4x256xf32> to vector<1x256xf32>
    %105 = vector.broadcast %103 : f32 to vector<1x256xf32>
    %106 = arith.mulf %105, %104 : vector<1x256xf32>
    %107 = arith.addf %102, %106 : vector<1x256xf32>
    %c3_37 = arith.constant 3 : index
    %c1_38 = arith.constant 1 : index
    %108 = memref.load %arg3[%c3_37, %c1_38] : memref<4x4xf32, #tpu.memory_space<smem>>
    %109 = vector.extract_strided_slice %25 {offsets = [1, 0], sizes = [1, 256], strides = [1, 1]} : vector<4x256xf32> to vector<1x256xf32>
    %110 = vector.broadcast %108 : f32 to vector<1x256xf32>
    %111 = arith.mulf %110, %109 : vector<1x256xf32>
    %112 = arith.addf %107, %111 : vector<1x256xf32>
    %c3_39 = arith.constant 3 : index
    %c2_40 = arith.constant 2 : index
    %113 = memref.load %arg3[%c3_39, %c2_40] : memref<4x4xf32, #tpu.memory_space<smem>>
    %114 = vector.extract_strided_slice %25 {offsets = [2, 0], sizes = [1, 256], strides = [1, 1]} : vector<4x256xf32> to vector<1x256xf32>
    %115 = vector.broadcast %113 : f32 to vector<1x256xf32>
    %116 = arith.mulf %115, %114 : vector<1x256xf32>
    %117 = arith.addf %112, %116 : vector<1x256xf32>
    %c3_41 = arith.constant 3 : index
    %c3_42 = arith.constant 3 : index
    %118 = memref.load %arg3[%c3_41, %c3_42] : memref<4x4xf32, #tpu.memory_space<smem>>
    %119 = vector.extract_strided_slice %25 {offsets = [3, 0], sizes = [1, 256], strides = [1, 1]} : vector<4x256xf32> to vector<1x256xf32>
    %120 = vector.broadcast %118 : f32 to vector<1x256xf32>
    %121 = arith.mulf %120, %119 : vector<1x256xf32>
    %122 = arith.addf %117, %121 : vector<1x256xf32>
    %123 = tpu.concatenate %50, %74, %98, %122 in 0 : vector<1x256xf32>, vector<1x256xf32>, vector<1x256xf32>, vector<1x256xf32> -> vector<4x256xf32>
    %c0_43 = arith.constant 0 : index
    %c0_44 = arith.constant 0 : index
    %c0_45 = arith.constant 0 : index
    %124 = vector.load %arg5[%c0_43, %c0_44, %c0_45] : memref<1x4x256xf32, #tpu.memory_space<vmem>>, vector<1x4x256xf32>
    %125 = vector.shape_cast %124 : vector<1x4x256xf32> to vector<4x256xf32>
    %126 = vector.shape_cast %16 : vector<4x256xf32> to vector<1x4x256xf32>
    tpu.vector_store %arg5[%c0_43, %c0_44, %c0_45], %126 {strides = array<i32>} : memref<1x4x256xf32, #tpu.memory_space<vmem>>, vector<1x4x256xf32>,
    %c0_46 = arith.constant 0 : index
    %c0_47 = arith.constant 0 : index
    %c0_48 = arith.constant 0 : index
    %127 = vector.load %arg6[%c0_46, %c0_47, %c0_48] : memref<1x4x256xf32, #tpu.memory_space<vmem>>, vector<1x4x256xf32>
    %128 = vector.shape_cast %127 : vector<1x4x256xf32> to vector<4x256xf32>
    %129 = vector.shape_cast %123 : vector<4x256xf32> to vector<1x4x256xf32>
    tpu.vector_store %arg6[%c0_46, %c0_47, %c0_48], %129 {strides = array<i32>} : memref<1x4x256xf32, #tpu.memory_space<vmem>>, vector<1x4x256xf32>,
    return
  }
  func.func @transform_0(%arg0: i32) -> (i32, i32, i32) {
    %c0_i32 = arith.constant 0 : i32
    %c0_i32_0 = arith.constant 0 : i32
    %c0_i32_1 = arith.constant 0 : i32
    return %arg0, %c0_i32, %c0_i32_0 : i32, i32, i32
  }
  func.func @transform_1(%arg0: i32) -> (i32, i32) {
    %c0_i32 = arith.constant 0 : i32
    %c0_i32_0 = arith.constant 0 : i32
    %c0_i32_1 = arith.constant 0 : i32
    return %c0_i32, %c0_i32_0 : i32, i32
  }
  func.func @transform_2(%arg0: i32) -> (i32, i32) {
    %c0_i32 = arith.constant 0 : i32
    %c0_i32_0 = arith.constant 0 : i32
    %c0_i32_1 = arith.constant 0 : i32
    return %c0_i32, %c0_i32_0 : i32, i32
  }
  func.func @transform_3(%arg0: i32) -> i32 {
    %c0_i32 = arith.constant 0 : i32
    %c0_i32_0 = arith.constant 0 : i32
    return %c0_i32 : i32
  }
  func.func @transform_4(%arg0: i32) -> (i32, i32, i32) {
    %c0_i32 = arith.constant 0 : i32
    %c0_i32_0 = arith.constant 0 : i32
    %c0_i32_1 = arith.constant 0 : i32
    return %arg0, %c0_i32, %c0_i32_0 : i32, i32, i32
  }
  func.func @transform_5(%arg0: i32) -> (i32, i32, i32) {
    %c0_i32 = arith.constant 0 : i32
    %c0_i32_0 = arith.constant 0 : i32
    %c0_i32_1 = arith.constant 0 : i32
    return %arg0, %c0_i32, %c0_i32_0 : i32, i32, i32
  }
}

</mosaic_0001>

<bundles_post_ra>
// kernel: gated_conv.1
= control target key start
LH: loop header
LB: loop body
LE: loop exit
PB: predicated region body
PF: predicated region fallthrough
CT: control target
= control target key end

     0   :  { %11 = vsyncpa [#allocation3], 0  ;;  %s1191_s0 = inlined_call_operand.vmem [shape: f32[2,37,256], index: 0, kind: input, shape index: {}]   ;;  %s1192_s1 = inlined_call_operand.vmem [shape: f32[16,37], index: 1, kind: input, shape index: {}]   ;;  %s1193_s2 = inlined_call_operand.vmem [shape: f32[4,4], index: 2, kind: input, shape index: {}]   ;;  %s1194_s3 = inlined_call_operand.vmem [shape: f32[4], index: 3, kind: input, shape index: {}]   ;;  %s1195_s4 = inlined_call_operand.vmem [shape: f32[2,4,256], index: 4, kind: output, shape index: {0}]   ;;  %s1196_s5 = inlined_call_operand.vmem [shape: f32[2,4,256], index: 5, kind: output, shape index: {1}]  }
   0x1   :  { %12 = vsyncpa [#allocation5], 0  ;;  %s941_s18 = smov 0  }
   0x2 LB: > { %s947_s19 = sadd.s32 4294967295, %s906_s18   ;;  %p767_p0 = scmp.ge.s32.totalorder %s906_s18, 1  ;;  %s906_s18 = sphi %s941_s18, %s18_s18  }
   0x3   : > { %p164_p1 = scmp.lt.s32.totalorder %s906_s18, 3  ;;  %s180_s22 = sshll.u32 %s1193_s2, 4  ;;  %s181_s22 = int_to_ptr.vmem [resolvable:$true] %s180_s22 }
   0x4   : > { %p1197_p3 = scmp.eq.s32.totalorder %s947_s19, 0  ;;  %s191_s26 = sshll.u32 %s1194_s3, 4  ;;  %s192_s26 = int_to_ptr.vmem [resolvable:$true] %s191_s26 }
   0x5   : > { %p954_p2 = pnand %p767_p0, %p164_p1  ;;  %s862_s28 = scalar_lea.vmem %s181_s22, 64 }
   0x6   : > { %p863_p6 = scmp.ne.s32.totalorder %s181_s22, %s862_s28  ;;  %p870_p10 = scmp.lt.s32.totalorder %s181_s22, %s181_s22 }
   0x7   : > { %s1199_s23 = scalar_select %p954_p2, 1, 0 }
   0x8   : > { %p824_p4 = pneg %p954_p2  ;;  %p871_p11 = scmp.lt.s32.totalorder %s862_s28, %s862_s28 }
   0xa   : > { %p966_p5 = pnand %p1197_p3, %p824_p4  ;;  %p872_p12 = por %p871_p11, %p870_p10 }
   0xc   : > { %p864_p7 = pneg %p966_p5 }
   0xe   : > { %p865_p8 = pnand %p864_p7, %p863_p6 }
  0x10   : > { %p866_p9 = pneg %p865_p8 }
  0x12   : > { %p873_p13 = pnand %p872_p12, %p866_p9 }
  0x14   : > { %876 = shalt.err (!%p873_p13)
}
  0x15   : > { %s908_s29 = smov [#allocation2]   ;;  %s877_s30 = scalar_lea.vmem %s192_s26, 16 }
  0x16   : > { %827 = dma.vmem_to_smem (!%p966_p5), %s181_s22, 64, %s908_s29, [#allocation3]  }
  0x17   : > { %p878_p0 = scmp.ne.s32.totalorder %s192_s26, %s877_s30  ;;  %p885_p3 = scmp.lt.s32.totalorder %s192_s26, %s192_s26 }
  0x18   : > { %p886_p2 = scmp.lt.s32.totalorder %s877_s30, %s877_s30 }
  0x19   : > { %p880_p1 = pnand %p878_p0, %p864_p7 }
  0x1a   : > { %p887_p6 = por %p886_p2, %p885_p3 }
  0x1b   : > { %p881_p4 = pneg %p880_p1 }
  0x1d   : > { %p888_p8 = pnand %p887_p6, %p881_p4 }
  0x1f   : > { %891 = shalt.err (!%p888_p8)
}
  0x20   : > { %s909_s6 = smov [#allocation4]   ;;  %p1201_p9 = scmp.ne.s32.totalorder %s1199_s23, 0 }
  0x21   : > { %830 = dma.vmem_to_smem (!%p966_p5), %s192_s26, 16, %s909_s6, [#allocation5]  }
  0x22   : > { %212 = sbr.rel (%p1201_p9) target bundleno = 315 (0x13b), region = 36  ;;  %p1202_p10 = scmp.eq.s32.totalorder (!%p1201_p9), %s947_s19, 0 }
  0x27   : > { %897 = dma.done.wait (%p1202_p10), [#allocation3], 64   ;;  %p1203_p11 = pmov %p1202_p10 }
  0x28   : > { %p1204_p7 = pmov %p1202_p10 }
  0x29   : > { %899 = vsyncadd (%p1203_p11), [#allocation3], 4294967232 }
  0x2a   : > { %901 = dma.done.wait (%p1204_p7), [#allocation5], 16   ;;  %p1205_p2 = pmov %p1204_p7 }
  0x2c   : > { %903 = vsyncadd (%p1205_p2), [#allocation5], 4294967280 }
  0x2d   : > { %222 = sfence }
  0x2e   : > { %p250_p3 = scmp.lt.s32.totalorder %s947_s19, 1  ;;  %v910_v0 = vmov 0.0   ;;  %vm284_vm0 = vcmask 1044480   ;;  %v275_v11 = vld [vmem:[%s1192_s1] sm:$0xff]  ;;  %vm277_vm1 = vcmask 302080   ;;  %v276_v12 = vld [vmem:[%s1192_s1 + $0x8] sm:$0xff] }
  0x2f   : > { %355 = vmatprep.mubr.f32.mxu0 %v910_v0  ;;  %361 = vmatprep.mubr.f32.mxu1 %v910_v0  ;;  %s1004_s15 = sld [smem:[#allocation4]]  ;;  %vm636_vm2 = vcmask 1040384   ;;  %vm639_vm3 = vcmask 1041408   ;;  %vm642_vm4 = vcmask 1042432  }
  0x30   : > { %s1207_s19 = smov (!%p250_p3, %s947_s19), 1  ;;  %s1006_s16 = sld [smem:[#allocation4 + $0x1]] }
  0x31   : > { %s815_s7 = smul.u32 80, %s1207_s19  ;;  %s1008_s17 = sld [smem:[#allocation4 + $0x2]] }
  0x32   : > { %s1010_s20 = sld [smem:[#allocation4 + $0x3]]  ;;  %s803_s12 = sshll.u32 %s1207_s19, 3 }
  0x33   : > { %s254_s10 = scalar_lea.vmem %s1191_s0, %s815_s7  ;;  %s1012_s21 = sld [smem:[#allocation2]] }
  0x34   : > { %v274_v1 = vld [vmem:[%s254_s10 + $0x48] sm:$0x1f]  ;;  %v273_v2 = vld [vmem:[%s254_s10 + $0x40] sm:$0x1f]  ;;  %v272_v3 = vld [vmem:[%s254_s10 + $0x38] sm:$0xff]  ;;  %s1014_s22 = sld [smem:[#allocation2 + $0x1]] }
  0x35   : > { %779 = vmatprep.subr.msk.mxu0 %vm284_vm0, %v274_v1  ;;  %v271_v4 = vld [vmem:[%s254_s10 + $0x30] sm:$0xff]  ;;  %805 = vmatprep.subr.msk.mxu1 %vm284_vm0, %v274_v1  ;;  %v270_v5 = vld [vmem:[%s254_s10 + $0x28] sm:$0xff]  ;;  %v269_v6 = vld [vmem:[%s254_s10 + $0x20] sm:$0xff]  ;;  %s1016_s23 = sld [smem:[#allocation2 + $0x2]]  ;;  %v405_v21 = vstv %s1004_s15  ;;  %s259_s15 = scalar_lea.vmem %s1195_s4, %s803_s12 }
  0x36   : > { %780 = vmatpush1.msk.msra.mxu0 %vm284_vm0, %v273_v2  ;;  %810 = vmatpush1.msk.msra.mxu1 %vm284_vm0, %v273_v2  ;;  %v268_v7 = vld [vmem:[%s254_s10 + $0x18] sm:$0xff]  ;;  %v267_v8 = vld [vmem:[%s254_s10 + $0x10] sm:$0xff]  ;;  %v266_v9 = vld [vmem:[%s254_s10 + $0x8] sm:$0xff]  ;;  %s1018_s24 = sld [smem:[#allocation2 + $0x3]]  ;;  %v457_v22 = vstv %s1006_s16 }
  0x37   : > { %315 = vmatprep.subr.mxu0 %v272_v3  ;;  %806 = vmatprep.subr.mxu1 %v272_v3  ;;  %v994_v10 = vld [vmem:[%s254_s10] sm:$0xff]  ;;  %s1020_s25 = sld [smem:[#allocation2 + $0x80]]  ;;  %v509_v23 = vstv %s1008_s17  ;;  %v1046_v26 = vadd.f32 %v405_v21, %v266_v9  ;;  %v1048_v27 = vadd.f32 %v457_v22, %v266_v9 }
  0x38   : > { %316 = vmatpush1.msra.mxu0 %v271_v4  ;;  %811 = vmatpush1.msra.mxu1 %v271_v4  ;;  %s1022_s26 = sld [smem:[#allocation2 + $0x81]]  ;;  %v561_v24 = vstv %s1010_s20  ;;  %v1050_v28 = vadd.f32 %v509_v23, %v266_v9  ;;  %v406_v30 = vadd.f32 %v405_v21, %v994_v10  ;;  %v1058_v31 = vadd.f32 %v457_v22, %v994_v10  ;;  %s264_s20 = scalar_lea.vmem %s1196_s5, %s803_s12 }
  0x39   : > { %317 = vmatprep.subr.mxu0 %v270_v5  ;;  %807 = vmatprep.subr.mxu1 %v270_v5  ;;  %s1024_s27 = sld [smem:[#allocation2 + $0x82]]  ;;  %v1052_v29 = vadd.f32 %v561_v24, %v266_v9  ;;  %v1061_v32 = vadd.f32 %v509_v23, %v994_v10  ;;  %v1064_v35 = vadd.f32 %v561_v24, %v994_v10  ;;  %v409_v36 = vstv %s1012_s21 }
  0x3a   : > { %318 = vmatpush1.msra.mxu0 %v269_v6  ;;  %812 = vmatpush1.msra.mxu1 %v269_v6  ;;  %s1026_s28 = sld [smem:[#allocation2 + $0x83]]  ;;  %v421_v37 = vstv %s1014_s22 }
  0x3b   : > { %319 = vmatprep.subr.mxu0 %v268_v7  ;;  %808 = vmatprep.subr.mxu1 %v268_v7  ;;  %s1028_s29 = sld [smem:[#allocation2 + $0x100]]  ;;  %v433_v38 = vstv %s1016_s23 }
  0x3c   : > { %320 = vmatpush1.msra.mxu0 %v267_v8  ;;  %813 = vmatpush1.msra.mxu1 %v267_v8  ;;  %s1030_s30 = sld [smem:[#allocation2 + $0x101]]  ;;  %v445_v42 = vstv %s1018_s24 }
  0x3d   : > { %321 = vmatprep.subr.mxu0 %v266_v9  ;;  %809 = vmatprep.subr.mxu1 %v266_v9  ;;  %s1032_s6 = sld [smem:[#allocation2 + $0x102]]  ;;  %v461_v43 = vstv %s1020_s25 }
  0x3e   : > { %322 = vmatpush1.msra.mxu0 %v994_v10  ;;  %814 = vmatpush1.msra.mxu1 %v994_v10  ;;  %s1034_s7 = sld [smem:[#allocation2 + $0x103]]  ;;  %v473_v45 = vstv %s1022_s26 }
  0x3f   : > { %781 = vmatmul.mubr.msk.f32.vlgmr.msra.gmra.mxu0 %vm277_vm1, %v275_v11  ;;  %782 = vmatmul.mubr.msk.f32.vlgmr.msra.gmra.mxu1 %vm277_vm1, %v276_v12  ;;  %s1036_s8 = sld [smem:[#allocation2 + $0x180]]  ;;  %v485_v46 = vstv %s1024_s27 }
  0x40   : > { %s1041_s9 = sld [smem:[#allocation2 + $0x181]]  ;;  %v497_v47 = vstv %s1026_s28 }
  0x41   : > { %s1044_s10 = sld [smem:[#allocation2 + $0x182]]  ;;  %v513_v51 = vstv %s1028_s29 }
  0x42   : > { %s1054_s11 = sld [smem:[#allocation2 + $0x183]]  ;;  %v525_v52 = vstv %s1030_s30 }
  0x43   : > { %v537_v56 = vstv %s1032_s6 }
  0x44   : > { %v549_v57 = vstv %s1034_s7 }
  0x45   : > { %v565_v61 = vstv %s1036_s8 }
  0x46   : > { %v577_v62 = vstv %s1041_s9 }
  0x47   : > { %v589_v2 = vstv %s1044_s10 }
  0x48   : > { %v601_v3 = vstv %s1054_s11 }
  0xff   : > { %v357_v13 = vpop.f32.mrf.mxu0  ;;  %v363_v15 = vpop.f32.mrf.mxu1 }
 0x100   : > { %v388_v14 = vmul.f32 0.5, %v357_v13  ;;  %v370_v17 = vmul.f32 0.5, %v363_v15 }
 0x101   : > { %v359_v16 = vpop.f32.mrf.mxu0  ;;  %v365_v19 = vpop.f32.mrf.mxu1 }
 0x102   : > { %846 = vtanh.f32 %v388_v14  ;;  %v389_v18 = vmul.f32 0.5, %v359_v16  ;;  %v371_v20 = vmul.f32 0.5, %v365_v19 }
 0x104   : > { %848 = vtanh.f32 %v389_v18 }
 0x105   : > { %850 = vtanh.f32 %v370_v17 }
 0x106   : > { %852 = vtanh.f32 %v371_v20 }
 0x107   : > { %854 = vtanh.f32 %v357_v13 }
 0x108   : > { %856 = vtanh.f32 %v363_v15 }
 0x109   : > { %858 = vtanh.f32 %v359_v16 }
 0x10a   : > { %860 = vtanh.f32 %v365_v19 }
 0x10f   : > { %v847_v25 = vpop.eup %846 }
 0x110   : > { %v392_v33 = vmul.f32 0.5, %v847_v25 }
 0x111   : > { %v849_v34 = vpop.eup %848 }
 0x112   : > { %v851_v39 = vpop.eup %850  ;;  %v394_v40 = vadd.f32 0.5, %v392_v33  ;;  %v393_v41 = vmul.f32 0.5, %v849_v34 }
 0x113   : > { %v374_v44 = vmul.f32 0.5, %v851_v39  ;;  %v853_v48 = vpop.eup %852 }
 0x114   : > { %v398_v49 = vrot.slane %v394_v40, 4  ;;  %v395_v50 = vadd.f32 0.5, %v393_v41  ;;  %v855_v53 = vpop.eup %854  ;;  %v375_v55 = vmul.f32 0.5, %v853_v48 }
 0x115   : > { %v376_v54 = vadd.f32 0.5, %v374_v44  ;;  %v857_v58 = vpop.eup %856 }
 0x116   : > { %v1078_v59 = vmul.f32 %v855_v53, %v398_v49  ;;  %v399_v60 = vrot.slane %v395_v50, 4  ;;  %v859_v63 = vpop.eup %858  ;;  %v377_v1 = vadd.f32 0.5, %v375_v55 }
 0x117   : > { %v380_v0 = vrot.slane %v376_v54, 4  ;;  %v861_v4 = vpop.eup %860 }
 0x118   : > { %v1084_v5 = vmul.f32 %v859_v63, %v399_v60  ;;  %v410_v6 = vmul.f32 %v409_v36, %v1078_v59  ;;  %v422_v7 = vmul.f32 %v421_v37, %v1078_v59  ;;  %v434_v8 = vmul.f32 %v433_v38, %v1078_v59 }
 0x119   : > { %v1089_v9 = vmul.f32 %v857_v58, %v380_v0  ;;  %v381_v10 = vrot.slane %v377_v1, 4  ;;  %v446_v11 = vmul.f32 %v445_v42, %v1078_v59  ;;  %v462_v12 = vmul.f32 %v461_v43, %v1078_v59 }
 0x11a   : > { %v411_v13 = vmul.f32 %v409_v36, %v1084_v5  ;;  %v414_v14 = vrot.slane %v410_v6, 4  ;;  %v423_v15 = vmul.f32 %v421_v37, %v1084_v5  ;;  %v426_v16 = vrot.slane %v422_v7, 5 }
 0x11b   : > { %v1095_v17 = vmul.f32 %v861_v4, %v381_v10  ;;  %v435_v18 = vmul.f32 %v433_v38, %v1084_v5  ;;  %v438_v19 = vrot.slane %v434_v8, 6  ;;  %v447_v20 = vmul.f32 %v445_v42, %v1084_v5 }
 0x11c   : > { %v415_v21 = vrot.slane %v411_v13, 4  ;;  %v418_v22 = vadd.f32 %v414_v14, %v406_v30  ;;  %v427_v23 = vrot.slane %v423_v15, 5  ;;  %v450_v24 = vrot.slane %v446_v11, 7 }
 0x11d   : > { %v439_v25 = vrot.slane %v435_v18, 6  ;;  %v451_v33 = vrot.slane %v447_v20, 7  ;;  %v463_v34 = vmul.f32 %v461_v43, %v1084_v5  ;;  %v466_v36 = vrot.slane %v462_v12, 3 }
 0x11e   : > { %v419_v37 = vadd.f32 %v415_v21, %v1046_v26  ;;  %v430_v39 = vadd.f32 %v426_v16, %v418_v22  ;;  %v474_v40 = vmul.f32 %v473_v45, %v1078_v59  ;;  %v475_v38 = vmul.f32 %v473_v45, %v1084_v5 }
 0x11f   : > { %v467_v41 = vrot.slane %v463_v34, 3  ;;  %v470_v42 = vadd.f32 %v466_v36, %v1058_v31  ;;  %v486_v30 = vmul.f32 %v485_v46, %v1078_v59  ;;  %v487_v44 = vmul.f32 %v485_v46, %v1084_v5 }
 0x120   : > { %v431_v43 = vadd.f32 %v427_v23, %v419_v37  ;;  %v442_v48 = vadd.f32 %v438_v19, %v430_v39  ;;  %v478_v49 = vrot.slane %v474_v40, 4  ;;  %v479_v50 = vrot.slane %v475_v38, 4 }
 0x121   : > { %v471_v26 = vadd.f32 %v467_v41, %v1048_v27  ;;  %v490_v53 = vrot.slane %v486_v30, 5  ;;  %v491_v54 = vrot.slane %v487_v44, 5  ;;  %v498_v45 = vmul.f32 %v497_v47, %v1078_v59 }
 0x122   : > { %v443_v31 = vadd.f32 %v439_v25, %v431_v43  ;;  %v1110_v55 = vadd.f32 %v450_v24, %v442_v48  ;;  %v482_v58 = vadd.f32 %v478_v49, %v470_v42  ;;  %v499_v46 = vmul.f32 %v497_v47, %v1084_v5 }
 0x123   : > { %v483_v60 = vadd.f32 %v479_v50, %v471_v26  ;;  %v502_v63 = vrot.slane %v498_v45, 6  ;;  %v514_v27 = vmul.f32 %v513_v51, %v1078_v59  ;;  %v515_v0 = vmul.f32 %v513_v51, %v1084_v5 }
 0x124   : > { %v1121_v1 = vadd.f32 %v451_v33, %v443_v31  ;;  %v494_v4 = vadd.f32 %v490_v53, %v482_v58  ;;  %v503_v6 = vrot.slane %v499_v46, 6  ;;  %v526_v7 = vmul.f32 %v525_v52, %v1078_v59 }
 0x125   : > { %v495_v8 = vadd.f32 %v491_v54, %v483_v60  ;;  %v518_v47 = vrot.slane %v514_v27, 2  ;;  %v519_v10 = vrot.slane %v515_v0, 2  ;;  %v527_v11 = vmul.f32 %v525_v52, %v1084_v5 }
 0x126   : > { %v506_v12 = vadd.f32 %v502_v63, %v494_v4  ;;  %v530_v13 = vrot.slane %v526_v7, 3  ;;  %v538_v51 = vmul.f32 %v537_v56, %v1078_v59  ;;  %v539_v14 = vmul.f32 %v537_v56, %v1084_v5 }
 0x127   : > { %v507_v15 = vadd.f32 %v503_v6, %v495_v8  ;;  %v522_v16 = vadd.f32 %v518_v47, %v1061_v32  ;;  %v523_v18 = vadd.f32 %v519_v10, %v1050_v28  ;;  %v531_v19 = vrot.slane %v527_v11, 3 }
 0x128   : > { %v542_v52 = vrot.slane %v538_v51, 4  ;;  %v543_v20 = vrot.slane %v539_v14, 4  ;;  %v550_v21 = vmul.f32 %v549_v57, %v1078_v59  ;;  %v551_v22 = vmul.f32 %v549_v57, %v1084_v5 }
 0x129   : > { %v534_v23 = vadd.f32 %v530_v13, %v522_v16  ;;  %v535_v56 = vadd.f32 %v531_v19, %v523_v18  ;;  %v566_v32 = vmul.f32 %v565_v61, %v1078_v59  ;;  %v567_v28 = vmul.f32 %v565_v61, %v1084_v5 }
 0x12a   : > { %v554_v24 = vrot.slane %v550_v21, 5  ;;  %v555_v25 = vrot.slane %v551_v22, 5  ;;  %v578_v33 = vmul.f32 %v577_v62, %v1078_v59  ;;  %v579_v57 = vmul.f32 %v577_v62, %v1084_v5 }
 0x12b   : > { %v546_v34 = vadd.f32 %v542_v52, %v534_v23  ;;  %v547_v36 = vadd.f32 %v543_v20, %v535_v56  ;;  %v570_v37 = vrot.slane %v566_v32, 1  ;;  %v571_v39 = vrot.slane %v567_v28, 1 }
 0x12c   : > { %v582_v40 = vrot.slane %v578_v33, 2  ;;  %v583_v38 = vrot.slane %v579_v57, 2  ;;  %v590_v61 = vmul.f32 %v589_v2, %v1078_v59  ;;  %v591_v41 = vmul.f32 %v589_v2, %v1084_v5 }
 0x12d   : > { %v558_v42 = vadd.f32 %v554_v24, %v546_v34  ;;  %v559_v30 = vadd.f32 %v555_v25, %v547_v36  ;;  %v574_v44 = vadd.f32 %v570_v37, %v1064_v35  ;;  %v575_v62 = vadd.f32 %v571_v39, %v1052_v29 }
 0x12e   : > { %v594_v43 = vrot.slane %v590_v61, 3  ;;  %v595_v48 = vrot.slane %v591_v41, 3  ;;  %v602_v49 = vmul.f32 %v601_v3, %v1078_v59  ;;  %v603_v50 = vmul.f32 %v601_v3, %v1084_v5 }
 0x12f   : > { %v586_v26 = vadd.f32 %v582_v40, %v574_v44  ;;  %v587_v53 = vadd.f32 %v583_v38, %v575_v62  ;;  %v614_v2 = vrot.slane %v1110_v55, 4  ;;  %v615_v54 = vrot.slane %v1121_v1, 4 }
 0x130   : > { %v606_v45 = vrot.slane %v602_v49, 4  ;;  %v607_v31 = vrot.slane %v603_v50, 4  ;;  %v620_v35 = vrot.slane %v506_v12, 4  ;;  %v621_v58 = vrot.slane %v507_v15, 4 }
 0x131   : > { %v598_v29 = vadd.f32 %v594_v43, %v586_v26  ;;  %v599_v59 = vadd.f32 %v595_v48, %v587_v53  ;;  %v626_v46 = vrot.slane %v558_v42, 4  ;;  %v627_v3 = vrot.slane %v559_v30, 4 }
 0x132   : > { %v637_v5 = vsel %vm636_vm2, %v614_v2, %v620_v35  ;;  %v638_v55 = vsel %vm636_vm2, %v615_v54, %v621_v58  ;;  %v647_v60 = vcombine.low %v1089_v9, %v1095_v17 }
 0x133   : > { %v610_v63 = vadd.f32 %v606_v45, %v598_v29  ;;  %v611_v27 = vadd.f32 %v607_v31, %v599_v59  ;;  %v640_v0 = vsel %vm639_vm3, %v637_v5, %v626_v46  ;;  %v641_v1 = vsel %vm639_vm3, %v638_v55, %v627_v3 }
 0x134   : > { %649 = vst [vmem:[%s259_s15] sm:$0xff] %v647_v60 }
 0x135   : > { %v632_v4 = vrot.slane %v610_v63, 4  ;;  %v633_v6 = vrot.slane %v611_v27, 4 }
 0x137   : > { %v643_v7 = vsel %vm642_vm4, %v640_v0, %v632_v4  ;;  %v644_v8 = vsel %vm642_vm4, %v641_v1, %v633_v6 }
 0x138   : > { %v652_v47 = vcombine.low %v643_v7, %v644_v8 }
 0x13a   : > { %654 = vst [vmem:[%s264_s20] sm:$0xff] %v652_v47 }
 0x13b PF: > { %s18_s18 = sadd.s32 1, %s906_s18  }
 0x13c   : > { %p15_p5 = scmp.ge.s32.totalorder %s18_s18, 4  }
 0x13e   :  { %17 = sbr.rel (!%p15_p5) target bundleno = 2 (0x2), region = 87 }
 0x143   :  { %692 = vsyncpa [#allocation3], 1 }
 0x144   :  { %694 = vsyncpa [#allocation3 + $0x1], 1 }
 0x145   :  { %695 = vsyncpa [#allocation5], 1 }

</bundles_post_ra>
